<compile_context>
chip_gen: v7x
topology: tpu7x:2x2x1
jax: 0.10.0
libtpu: 0.0.40
codegen_flags: <defaults>
</compile_context>

<pallas_src>
import math

import jax
import jax.numpy as jnp
from jax.experimental import pallas as pl
from jax.experimental.pallas import tpu as pltpu


def _pos_enc_kernel(x_ref, pe_ref, o_ref):
    # x_ref, o_ref : (bt, ts, cols); pe_ref : (ts, cols) broadcast over batch.
    o_ref[...] = (x_ref[...] + pe_ref[...][None, :, :]).astype(o_ref.dtype)


def make_pe_table(d_model: int, max_len: int = 5000,
                  dtype=jnp.float32) -> jnp.ndarray:
    """Same construction as the PyTorch __init__, returned as [max_len, d_model].

    Built directly in `dtype` so no per-forward cast is needed.
    """
    assert d_model % 2 == 0, "d_model must be even (same constraint as PyTorch)"
    position = jnp.arange(max_len, dtype=jnp.float32)[:, None]          # [max_len, 1]
    div_term = jnp.exp(
        jnp.arange(0, d_model, 2, dtype=jnp.float32)
        * (-math.log(10000.0) / d_model)
    )                                                                    # [d_model//2]
    angles = position * div_term                                         # [max_len, d_model//2]
    pe = jnp.zeros((max_len, d_model), dtype=jnp.float32)
    pe = pe.at[:, 0::2].set(jnp.sin(angles))
    pe = pe.at[:, 1::2].set(jnp.cos(angles))
    return pe.astype(dtype)


def _sublane_multiple(dtype) -> int:
    # Native packed sublane count: 8 rows for 32-bit, 16 for 16-bit, 32 for 8-bit.
    itemsize = jnp.dtype(dtype).itemsize
    return max(8, 32 // max(itemsize, 1))


def _choose_tiles(B: int, rows: int, row_bytes: int,
                  target_block_bytes: int, sub: int):
    """Return (bt, ts): batches per block and rows per block."""
    slab_bytes = rows * row_bytes
    if slab_bytes <= target_block_bytes:
        # Small per-batch slab: pack several batches into one block.
        bt = max(1, min(B, target_block_bytes // max(slab_bytes, 1)))
        ts = rows
        # v7x: if everything collapsed to a single grid step but the problem is
        # big enough to matter (> ~2 MiB), split the seq axis so both
        # TensorCores get disjoint work (measured-neutral on v5e/v6e).
        if bt >= B and rows >= 2 * sub and B * slab_bytes > (1 << 21):
            half = ((rows + 1) // 2 + sub - 1) // sub * sub
            ts = min(half, rows)
    else:
        # Large slab: one batch per block, tile the seq/row axis.
        bt = 1
        ts = (target_block_bytes // row_bytes) // sub * sub
        ts = max(sub, ts)
        ts = min(ts, rows)
    return bt, ts


def positional_encoding(
    x: jnp.ndarray,
    pe_table: jnp.ndarray,
    *,
    target_block_bytes: int = 4 * 1024 * 1024,   # <= ~24 MiB double-buffered total
) -> jnp.ndarray:
    """x: [B, S, D]. Returns x + pe[:S] broadcast over batch (eval-mode dropout)."""
    B, S, D = x.shape
    assert S <= pe_table.shape[0], "sequence longer than positional table"
    pe_slice = pe_table[:S]
    if pe_slice.dtype != x.dtype:      # avoided when the table is pre-built in x.dtype
        pe_slice = pe_slice.astype(x.dtype)

    # Lane-dense layout: present a last dim that is a multiple of 128 when the
    # per-batch (S, D) slab folds cleanly; otherwise keep (S, D) as-is
    # (explicit fallback: last dim not a multiple of 128 -> masked stores).
    if D % 128 != 0 and (S * D) % 128 == 0:
        rows, cols = (S * D) // 128, 128
    else:
        rows, cols = S, D
    x2 = x.reshape(B, rows, cols)
    pe2 = pe_slice.reshape(rows, cols)

    itemsize = jnp.dtype(x.dtype).itemsize
    row_bytes = cols * itemsize
    sub = _sublane_multiple(x.dtype)
    bt, ts = _choose_tiles(B, rows, row_bytes, target_block_bytes, sub)
    n_seq_tiles = pl.cdiv(rows, ts)
    n_batch_tiles = pl.cdiv(B, bt)

    out = pl.pallas_call(
        _pos_enc_kernel,
        out_shape=jax.ShapeDtypeStruct((B, rows, cols), x.dtype),
        grid_spec=pltpu.PrefetchScalarGridSpec(
            num_scalar_prefetch=0,
            grid=(n_seq_tiles, n_batch_tiles),                 # seq outer, batch inner
            in_specs=[
                pl.BlockSpec((bt, ts, cols), lambda s, b: (b, s, 0)),   # x block
                pl.BlockSpec((ts, cols), lambda s, b: (s, 0)),          # pe tile (batch-invariant)
            ],
            out_specs=pl.BlockSpec((bt, ts, cols), lambda s, b: (b, s, 0)),
        ),
        compiler_params=pltpu.CompilerParams(
            dimension_semantics=("parallel", "arbitrary"),     # shard seq across TCs
        ),
    )(x2, pe2)

    return out.reshape(B, S, D)


if __name__ == "__main__":
    key = jax.random.PRNGKey(0)

    # Test 1: shapes implied by the module (batch=2, seq=8, d_model=32).
    # Folds to (rows=2, cols=128); whole problem is a single grid step.
    B, S, D = 2, 8, 32
    x = jax.random.normal(key, (B, S, D), dtype=jnp.float32)
    pe_table = make_pe_table(D, max_len=5000, dtype=jnp.float32)
    ref = x + pe_table[:S][None, :, :]
    out = jax.block_until_ready(positional_encoding(x, pe_table))
    assert out.shape == (B, S, D)
    assert jnp.allclose(out, ref, atol=1e-6), "mismatch (small folded path)"

    # Test 2: lane-dense D=128 path with a forced multi-tile seq grid
    # (tiny per-block budget -> 8-row f32 tiles, 5 seq tiles x 2 batch tiles).
    B2, S2, D2 = 2, 40, 128
    x2 = jax.random.normal(key, (B2, S2, D2), dtype=jnp.float32)
    pe2_tab = make_pe_table(D2, max_len=64, dtype=jnp.float32)
    ref2 = x2 + pe2_tab[:S2][None, :, :]
    out2 = jax.block_until_ready(
        positional_encoding(x2, pe2_tab, target_block_bytes=8 * 128 * 4)
    )
    assert jnp.allclose(out2, ref2, atol=1e-6), "mismatch (tiled f32 path)"

    # Test 3: bf16 path with dtype-aware (16-row) tiling.
    B3, S3, D3 = 2, 64, 128
    x3 = jax.random.normal(key, (B3, S3, D3), dtype=jnp.bfloat16)
    pe3_tab = make_pe_table(D3, max_len=128, dtype=jnp.bfloat16)
    ref3 = x3 + pe3_tab[:S3][None, :, :]
    out3 = jax.block_until_ready(
        positional_encoding(x3, pe3_tab, target_block_bytes=16 * 128 * 2)
    )
    assert jnp.allclose(out3.astype(jnp.float32), ref3.astype(jnp.float32),
                        atol=1e-2), "mismatch (tiled bf16 path)"

    print("KERNEL_OK")
</pallas_src>

<mosaic_0001>
module attributes {stable_mosaic.version = 11 : i64} {
  func.func @_pos_enc_kernel(%arg0: i32, %arg1: i32, %arg2: memref<2x2x128xf32, #tpu.memory_space<vmem>>, %arg3: memref<2x128xf32, #tpu.memory_space<vmem>>, %arg4: memref<2x2x128xf32, #tpu.memory_space<vmem>>) attributes {dimension_semantics = [#tpu.dimension_semantics<parallel>, #tpu.dimension_semantics<arbitrary>], iteration_bounds = array<i64: 1, 1>, scalar_prefetch = 0 : i64, scratch_operands = 0 : i64, tpu.core_type = #tpu.core_type<tc>, window_params = [{transform_indices = @transform_0, window_bounds = array<i64: 2, 2, 128>}, {transform_indices = @transform_1, window_bounds = array<i64: 2, 128>}, {transform_indices = @transform_2, window_bounds = array<i64: 2, 2, 128>}]} {
    %c0 = arith.constant 0 : index
    %c0_0 = arith.constant 0 : index
    %c0_1 = arith.constant 0 : index
    %0 = vector.load %arg2[%c0, %c0_0, %c0_1] : memref<2x2x128xf32, #tpu.memory_space<vmem>>, vector<2x2x128xf32>
    %c0_2 = arith.constant 0 : index
    %c0_3 = arith.constant 0 : index
    %1 = vector.load %arg3[%c0_2, %c0_3] : memref<2x128xf32, #tpu.memory_space<vmem>>, vector<2x128xf32>
    %2 = vector.shape_cast %1 : vector<2x128xf32> to vector<1x2x128xf32>
    %3 = vector.broadcast %2 : vector<1x2x128xf32> to vector<2x2x128xf32>
    %4 = arith.addf %0, %3 : vector<2x2x128xf32>
    %c0_4 = arith.constant 0 : index
    %c0_5 = arith.constant 0 : index
    %c0_6 = arith.constant 0 : index
    %5 = vector.load %arg4[%c0_4, %c0_5, %c0_6] : memref<2x2x128xf32, #tpu.memory_space<vmem>>, vector<2x2x128xf32>
    tpu.vector_store %arg4[%c0_4, %c0_5, %c0_6], %4 {strides = array<i32>} : memref<2x2x128xf32, #tpu.memory_space<vmem>>, vector<2x2x128xf32>,
    return
  }
  func.func @transform_0(%arg0: i32, %arg1: i32) -> (i32, i32, i32) {
    %c0_i32 = arith.constant 0 : i32
    %c0_i32_0 = arith.constant 0 : i32
    return %arg1, %arg0, %c0_i32 : i32, i32, i32
  }
  func.func @transform_1(%arg0: i32, %arg1: i32) -> (i32, i32) {
    %c0_i32 = arith.constant 0 : i32
    %c0_i32_0 = arith.constant 0 : i32
    return %arg0, %c0_i32 : i32, i32
  }
  func.func @transform_2(%arg0: i32, %arg1: i32) -> (i32, i32, i32) {
    %c0_i32 = arith.constant 0 : i32
    %c0_i32_0 = arith.constant 0 : i32
    return %arg1, %arg0, %c0_i32 : i32, i32, i32
  }
}

</mosaic_0001>

<bundles_post_ra>
// kernel: tpu_custom_call.1
= control target key start
LH: loop header
LB: loop body
LE: loop exit
PB: predicated region body
PF: predicated region fallthrough
CT: control target
= control target key end

     0   :  { %7 = vsyncpa [#allocation3], 0  ;;  %s154_s0 = inlined_call_operand.hbm [shape: f32[2,2,128], index: 0, kind: input, shape index: {}]   ;;  %s155_s1 = inlined_call_operand.vmem [shape: f32[2,128], index: 1, kind: input, shape index: {}]   ;;  %s156_s2 = inlined_call_operand.hbm [shape: f32[2,2,128], index: 2, kind: output, shape index: {}]  }
   0x1   :  { %8 = vsyncpa [#allocation4], 0  ;;  %s102_s9 = smov [#allocation2]   ;;  %s54_s13 = scalar_lea.hbm %s154_s0, 64 }
   0x2   :  { %s14_s10 = sshll.u32 %s102_s9, 4  ;;  %p55_p0 = scmp.ne.s32.totalorder %s154_s0, %s54_s13  ;;  %s15_s10 = int_to_ptr.vmem [resolvable:$true] %s14_s10 }
   0x3   :  { %p58_p1 = scmp.lt.u32.totalorder %s54_s13, %s154_s0 }
   0x5   :  { %p60_p2 = pnand %p58_p1, %p55_p0 }
   0x7   :  { %63 = shalt.err (!%p60_p2)
}
   0x8   :  { %s64_s18 = scalar_lea.vmem %s15_s10, 64  ;;  %p69_p4 = scmp.lt.s32.totalorder %s15_s10, %s15_s10 }
   0x9   :  { %p65_p3 = scmp.ne.s32.totalorder %s15_s10, %s64_s18  ;;  %p70_p5 = scmp.lt.s32.totalorder %s64_s18, %s64_s18 }
   0xb   :  { %p71_p6 = por %p70_p5, %p69_p4 }
   0xd   :  { %p72_p7 = pnand %p71_p6, %p65_p3 }
   0xf   :  { %75 = shalt.err (!%p72_p7)
}
  0x10   :  { %s103_s19 = smov 32   ;;  %s104_s20 = smov 2  }
  0x11   :  { %20 = dma.hbm_to_vmem [thread:$0]  %s154_s0, 64, %s15_s10, [#allocation3], %s103_s19, %s103_s19, %s104_s20  }
  0x12   :  { %98 = dma.done.wait [#allocation3], 64  }
  0x13   :  { %99 = vsyncadd [#allocation3], 4294967232  ;;  %s105_s23 = smov [#allocation5]   ;;  %v26_v0 = vld [vmem:[#allocation2] sm:$0x3] }
  0x14   :  { %s38_s24 = sshll.u32 %s105_s23, 4  ;;  %v28_v1 = vld [vmem:[%s155_s1] sm:$0x3]  ;;  %v27_v2 = vld [vmem:[#allocation2 + $0x2] sm:$0x3]  ;;  %s39_s24 = int_to_ptr.vmem [resolvable:$true] %s38_s24 }
  0x15   :  { %v29_v3 = vadd.f32 %v28_v1, %v26_v0  ;;  %v30_v4 = vadd.f32 %v28_v1, %v27_v2  ;;  %s76_s27 = scalar_lea.vmem %s39_s24, 64  ;;  %p81_p9 = scmp.lt.s32.totalorder %s39_s24, %s39_s24 }
  0x16   :  { %p77_p8 = scmp.ne.s32.totalorder %s39_s24, %s76_s27  ;;  %p82_p10 = scmp.lt.s32.totalorder %s76_s27, %s76_s27 }
  0x17   :  { %31 = vst [vmem:[#allocation5] sm:$0x3] %v29_v3  ;;  %32 = vst [vmem:[#allocation5 + $0x2] sm:$0x3] %v30_v4 }
  0x18   :  { %p83_p11 = por %p82_p10, %p81_p9 }
  0x1a   :  { %p84_p12 = pnand %p83_p11, %p77_p8 }
  0x1c   :  { %87 = shalt.err (!%p84_p12)
}
  0x1d   :  { %s88_s29 = scalar_lea.hbm %s156_s2, 64 }
  0x1e   :  { %p89_p13 = scmp.ne.s32.totalorder %s156_s2, %s88_s29  ;;  %p92_p0 = scmp.lt.u32.totalorder %s88_s29, %s156_s2 }
  0x20   :  { %p94_p1 = pnand %p92_p0, %p89_p13 }
  0x22   :  { %97 = shalt.err (!%p94_p1)
}
  0x23   :  { %44 = dma.vmem_to_hbm [thread:$0]  %s39_s24, 64, %s156_s2, [#allocation4], %s103_s19, %s103_s19, %s104_s20  }
  0x24   :  { %100 = dma.done.wait [#allocation4], 64  }
  0x25   :  { %101 = vsyncadd [#allocation4], 4294967232 }
  0x26   :  { %48 = vsyncpa [#allocation3], 1 }
  0x27   :  { %49 = vsyncpa [#allocation4], 1 }

</bundles_post_ra>
